<compile_context>
chip_gen: v7x
topology: tpu7x:2x2x1
jax: 0.10.0
libtpu: 0.0.40
codegen_flags: <defaults>
</compile_context>

<pallas_src>
import jax
import jax.numpy as jnp
from jax.experimental import pallas as pl
from jax.experimental.pallas import tpu as pltpu

KERNEL_SIZE = 7


def _round_up(n, m):
    return ((n + m - 1) // m) * m


def tdnn7_kernel(x_ref, w1_ref, wconv_ref, bconv_ref, b1_ref, w2_ref, b2_ref, o_ref):
    """One batch tile.

    x_ref:     (TILE_B, L)  VMEM  input rows (channel dim squeezed)
    w1_ref:    (2, Lout)    VMEM  fc_1 weight (one row per output unit)
    wconv_ref: (7,)         SMEM  conv1d taps
    bconv_ref: (1,)         SMEM  conv1d bias
    b1_ref:    (2,)         SMEM  fc_1 bias
    w2_ref:    (2,)         SMEM  classifier weight
    b2_ref:    (1,)         SMEM  classifier bias
    o_ref:     (TILE_B, 1)  VMEM  sigmoid output
    """
    x = x_ref[...]
    _, L = x.shape
    lout = L - KERNEL_SIZE + 1

    # Valid 1-D cross-correlation (torch Conv1d): 7 shifted taps, coefficients from SMEM.
    # For large L, pltpu.roll (XLU) would avoid the shifted lane slices; at small L the whole
    # row sits in one vreg, so the static slice is a cheap intra-vreg lane shift.
    acc = wconv_ref[0] * x[:, 0:lout]
    for k in range(1, KERNEL_SIZE):
        acc = acc + wconv_ref[k] * x[:, k:k + lout]
    h = jnp.maximum(acc + bconv_ref[0], 0.0)                       # (TILE_B, Lout)

    # fc_1 (out_features=2) + ReLU on the VPU/XLU: broadcast-multiply + lane reduction.
    w1 = w1_ref[...]                                               # (2, Lout)
    h1_0 = jnp.sum(h * w1[0:1, :], axis=-1, keepdims=True) + b1_ref[0]
    h1_1 = jnp.sum(h * w1[1:2, :], axis=-1, keepdims=True) + b1_ref[1]
    h1_0 = jnp.maximum(h1_0, 0.0)
    h1_1 = jnp.maximum(h1_1, 0.0)

    # classifier (2 -> 1) as a 2-term scalar combine, then sigmoid (EUP).
    logits = w2_ref[0] * h1_0 + w2_ref[1] * h1_1 + b2_ref[0]       # (TILE_B, 1)
    o_ref[...] = jax.nn.sigmoid(logits)


def tdnn7_forward(x, params, tile_b=None):
    """x: (B, 1, L) float32 (NCW, like PyTorch). Returns (B,) float32."""
    B, C, L = x.shape
    assert C == 1
    lout = L - KERNEL_SIZE + 1

    x2d = x.reshape(B, L)  # squeeze channel dim (glue)

    if tile_b is None:
        # Largest multiple of 8 covering B, capped so a double-buffered x tile stays far under
        # the v7x scoped-VMEM budget (~4 MiB per tile => 8 MiB double buffered, with headroom).
        vmem_cap_rows = max(8, ((4 * 1024 * 1024) // (L * 4)) // 8 * 8)
        tile_b = min(2048, vmem_cap_rows, _round_up(B, 8))
    b_pad = _round_up(B, tile_b)
    if b_pad != B:
        x2d = jnp.pad(x2d, ((0, b_pad - B), (0, 0)))  # padded rows discarded after the call

    wconv = params["conv_w"].reshape(KERNEL_SIZE)   # (7,)   SMEM
    bconv = params["conv_b"].reshape(1)             # (1,)   SMEM
    w1 = params["fc1_w"].reshape(2, lout)           # (2,Lout) VMEM (row per output unit)
    b1 = params["fc1_b"].reshape(2)                 # (2,)   SMEM
    w2 = params["clf_w"].reshape(2)                 # (2,)   SMEM
    b2 = params["clf_b"].reshape(1)                 # (1,)   SMEM

    grid = (b_pad // tile_b,)
    out = pl.pallas_call(
        tdnn7_kernel,
        out_shape=jax.ShapeDtypeStruct((b_pad, 1), jnp.float32),
        grid=grid,
        in_specs=[
            pl.BlockSpec((tile_b, L), lambda i: (i, 0)),          # x tile (pipelined)
            pl.BlockSpec((2, lout), lambda i: (0, 0)),            # fc_1 weight (resident)
            pl.BlockSpec(memory_space=pltpu.SMEM),                # conv taps
            pl.BlockSpec(memory_space=pltpu.SMEM),                # conv bias
            pl.BlockSpec(memory_space=pltpu.SMEM),                # fc_1 bias
            pl.BlockSpec(memory_space=pltpu.SMEM),                # classifier weight
            pl.BlockSpec(memory_space=pltpu.SMEM),                # classifier bias
        ],
        out_specs=pl.BlockSpec((tile_b, 1), lambda i: (i, 0)),
        compiler_params=pltpu.CompilerParams(
            dimension_semantics=("parallel",),
            vmem_limit_bytes=32 * 1024 * 1024,
        ),
    )(x2d, w1, wconv, bconv, b1, w2, b2)

    # torch: sigmoid(flatten(x)) -> (B,)
    return out.reshape(b_pad)[:B]


def init_params(key, sequence_len):
    """Deterministic synthetic init matching TDNN_7 parameter shapes."""
    lout = sequence_len - KERNEL_SIZE + 1
    ks = jax.random.split(key, 6)
    return {
        "conv_w": jax.random.normal(ks[0], (1, 1, KERNEL_SIZE), jnp.float32) * 0.3,
        "conv_b": jax.random.normal(ks[1], (1,), jnp.float32) * 0.1,
        "fc1_w": jax.random.normal(ks[2], (2, lout), jnp.float32) * 0.3,
        "fc1_b": jax.random.normal(ks[3], (2,), jnp.float32) * 0.1,
        "clf_w": jax.random.normal(ks[4], (1, 2), jnp.float32) * 0.3,
        "clf_b": jax.random.normal(ks[5], (1,), jnp.float32) * 0.1,
    }


def reference_forward(x, params):
    """Pure-JAX reference reproducing the PyTorch forward exactly."""
    B, _, L = x.shape
    lout = L - KERNEL_SIZE + 1
    xs = x.reshape(B, L)
    w = params["conv_w"].reshape(KERNEL_SIZE)
    conv = jnp.stack(
        [jnp.sum(xs[:, t:t + KERNEL_SIZE] * w, axis=1) for t in range(lout)], axis=1
    ) + params["conv_b"][0]
    h = jnp.maximum(conv, 0.0)
    h1 = jnp.maximum(h @ params["fc1_w"].T + params["fc1_b"], 0.0)
    logits = h1 @ params["clf_w"].T + params["clf_b"]
    return jax.nn.sigmoid(logits.reshape(B))


if __name__ == "__main__":
    sequence_len = 16
    batch = 2

    key = jax.random.PRNGKey(0)
    k_x, k_p = jax.random.split(key)
    x = jax.random.normal(k_x, (batch, 1, sequence_len), jnp.float32)
    params = init_params(k_p, sequence_len)

    out = tdnn7_forward(x, params)
    out = jax.block_until_ready(out)

    ref = reference_forward(x, params)
    assert out.shape == (batch,)
    assert jnp.allclose(out, ref, atol=1e-5, rtol=1e-5), (out, ref)

    print("KERNEL_OK")
</pallas_src>

<mosaic_0001>
module attributes {stable_mosaic.version = 11 : i64} {
  func.func @tdnn7_kernel(%arg0: i32, %arg1: memref<8x16xf32, #tpu.memory_space<vmem>>, %arg2: memref<2x10xf32, #tpu.memory_space<vmem>>, %arg3: memref<7xf32, #tpu.memory_space<smem>>, %arg4: memref<1xf32, #tpu.memory_space<smem>>, %arg5: memref<2xf32, #tpu.memory_space<smem>>, %arg6: memref<2xf32, #tpu.memory_space<smem>>, %arg7: memref<1xf32, #tpu.memory_space<smem>>, %arg8: memref<8x1xf32, #tpu.memory_space<vmem>>) attributes {dimension_semantics = [#tpu.dimension_semantics<parallel>], iteration_bounds = array<i64: 1>, scalar_prefetch = 0 : i64, scratch_operands = 0 : i64, tpu.core_type = #tpu.core_type<tc>, window_params = [{transform_indices = @transform_0, window_bounds = array<i64: 8, 16>}, {pipeline_mode = #tpu.pipeline_mode<synchronous>, transform_indices = @transform_1, window_bounds = array<i64: 2, 10>}, {transform_indices = @transform_2, window_bounds = array<i64: 7>}, {transform_indices = @transform_3, window_bounds = array<i64: 1>}, {transform_indices = @transform_4, window_bounds = array<i64: 2>}, {transform_indices = @transform_5, window_bounds = array<i64: 2>}, {transform_indices = @transform_6, window_bounds = array<i64: 1>}, {transform_indices = @transform_7, window_bounds = array<i64: 8, 1>}]} {
    %c0 = arith.constant 0 : index
    %c0_0 = arith.constant 0 : index
    %0 = vector.load %arg1[%c0, %c0_0] : memref<8x16xf32, #tpu.memory_space<vmem>>, vector<8x16xf32>
    %c0_1 = arith.constant 0 : index
    %1 = memref.load %arg3[%c0_1] : memref<7xf32, #tpu.memory_space<smem>>
    %2 = vector.extract_strided_slice %0 {offsets = [0, 0], sizes = [8, 10], strides = [1, 1]} : vector<8x16xf32> to vector<8x10xf32>
    %3 = vector.broadcast %1 : f32 to vector<8x10xf32>
    %4 = arith.mulf %3, %2 : vector<8x10xf32>
    %c1 = arith.constant 1 : index
    %5 = memref.load %arg3[%c1] : memref<7xf32, #tpu.memory_space<smem>>
    %6 = vector.extract_strided_slice %0 {offsets = [0, 1], sizes = [8, 10], strides = [1, 1]} : vector<8x16xf32> to vector<8x10xf32>
    %7 = vector.broadcast %5 : f32 to vector<8x10xf32>
    %8 = arith.mulf %7, %6 : vector<8x10xf32>
    %9 = arith.addf %4, %8 : vector<8x10xf32>
    %c2 = arith.constant 2 : index
    %10 = memref.load %arg3[%c2] : memref<7xf32, #tpu.memory_space<smem>>
    %11 = vector.extract_strided_slice %0 {offsets = [0, 2], sizes = [8, 10], strides = [1, 1]} : vector<8x16xf32> to vector<8x10xf32>
    %12 = vector.broadcast %10 : f32 to vector<8x10xf32>
    %13 = arith.mulf %12, %11 : vector<8x10xf32>
    %14 = arith.addf %9, %13 : vector<8x10xf32>
    %c3 = arith.constant 3 : index
    %15 = memref.load %arg3[%c3] : memref<7xf32, #tpu.memory_space<smem>>
    %16 = vector.extract_strided_slice %0 {offsets = [0, 3], sizes = [8, 10], strides = [1, 1]} : vector<8x16xf32> to vector<8x10xf32>
    %17 = vector.broadcast %15 : f32 to vector<8x10xf32>
    %18 = arith.mulf %17, %16 : vector<8x10xf32>
    %19 = arith.addf %14, %18 : vector<8x10xf32>
    %c4 = arith.constant 4 : index
    %20 = memref.load %arg3[%c4] : memref<7xf32, #tpu.memory_space<smem>>
    %21 = vector.extract_strided_slice %0 {offsets = [0, 4], sizes = [8, 10], strides = [1, 1]} : vector<8x16xf32> to vector<8x10xf32>
    %22 = vector.broadcast %20 : f32 to vector<8x10xf32>
    %23 = arith.mulf %22, %21 : vector<8x10xf32>
    %24 = arith.addf %19, %23 : vector<8x10xf32>
    %c5 = arith.constant 5 : index
    %25 = memref.load %arg3[%c5] : memref<7xf32, #tpu.memory_space<smem>>
    %26 = vector.extract_strided_slice %0 {offsets = [0, 5], sizes = [8, 10], strides = [1, 1]} : vector<8x16xf32> to vector<8x10xf32>
    %27 = vector.broadcast %25 : f32 to vector<8x10xf32>
    %28 = arith.mulf %27, %26 : vector<8x10xf32>
    %29 = arith.addf %24, %28 : vector<8x10xf32>
    %c6 = arith.constant 6 : index
    %30 = memref.load %arg3[%c6] : memref<7xf32, #tpu.memory_space<smem>>
    %31 = vector.extract_strided_slice %0 {offsets = [0, 6], sizes = [8, 10], strides = [1, 1]} : vector<8x16xf32> to vector<8x10xf32>
    %32 = vector.broadcast %30 : f32 to vector<8x10xf32>
    %33 = arith.mulf %32, %31 : vector<8x10xf32>
    %34 = arith.addf %29, %33 : vector<8x10xf32>
    %c0_2 = arith.constant 0 : index
    %35 = memref.load %arg4[%c0_2] : memref<1xf32, #tpu.memory_space<smem>>
    %36 = vector.broadcast %35 : f32 to vector<8x10xf32>
    %37 = arith.addf %34, %36 : vector<8x10xf32>
    %cst = arith.constant 0.000000e+00 : f32
    %38 = vector.broadcast %cst : f32 to vector<8x10xf32>
    %39 = arith.maximumf %37, %38 : vector<8x10xf32>
    %c0_3 = arith.constant 0 : index
    %c0_4 = arith.constant 0 : index
    %40 = vector.load %arg2[%c0_3, %c0_4] : memref<2x10xf32, #tpu.memory_space<vmem>>, vector<2x10xf32>
    %41 = vector.extract_strided_slice %40 {offsets = [0, 0], sizes = [1, 10], strides = [1, 1]} : vector<2x10xf32> to vector<1x10xf32>
    %42 = vector.broadcast %41 : vector<1x10xf32> to vector<8x10xf32>
    %43 = arith.mulf %39, %42 : vector<8x10xf32>
    %cst_5 = arith.constant dense<0.000000e+00> : vector<8xf32>
    %44 = vector.multi_reduction <add>, %43, %cst_5 [1] : vector<8x10xf32> to vector<8xf32>
    %45 = vector.shape_cast %44 : vector<8xf32> to vector<8x1xf32>
    %c0_6 = arith.constant 0 : index
    %46 = memref.load %arg5[%c0_6] : memref<2xf32, #tpu.memory_space<smem>>
    %47 = vector.broadcast %46 : f32 to vector<8x1xf32>
    %48 = arith.addf %45, %47 : vector<8x1xf32>
    %49 = vector.extract_strided_slice %40 {offsets = [1, 0], sizes = [1, 10], strides = [1, 1]} : vector<2x10xf32> to vector<1x10xf32>
    %50 = vector.broadcast %49 : vector<1x10xf32> to vector<8x10xf32>
    %51 = arith.mulf %39, %50 : vector<8x10xf32>
    %cst_7 = arith.constant dense<0.000000e+00> : vector<8xf32>
    %52 = vector.multi_reduction <add>, %51, %cst_7 [1] : vector<8x10xf32> to vector<8xf32>
    %53 = vector.shape_cast %52 : vector<8xf32> to vector<8x1xf32>
    %c1_8 = arith.constant 1 : index
    %54 = memref.load %arg5[%c1_8] : memref<2xf32, #tpu.memory_space<smem>>
    %55 = vector.broadcast %54 : f32 to vector<8x1xf32>
    %56 = arith.addf %53, %55 : vector<8x1xf32>
    %cst_9 = arith.constant 0.000000e+00 : f32
    %57 = vector.broadcast %cst_9 : f32 to vector<8x1xf32>
    %58 = arith.maximumf %48, %57 : vector<8x1xf32>
    %cst_10 = arith.constant 0.000000e+00 : f32
    %59 = vector.broadcast %cst_10 : f32 to vector<8x1xf32>
    %60 = arith.maximumf %56, %59 : vector<8x1xf32>
    %c0_11 = arith.constant 0 : index
    %61 = memref.load %arg6[%c0_11] : memref<2xf32, #tpu.memory_space<smem>>
    %62 = vector.broadcast %61 : f32 to vector<8x1xf32>
    %63 = arith.mulf %62, %58 : vector<8x1xf32>
    %c1_12 = arith.constant 1 : index
    %64 = memref.load %arg6[%c1_12] : memref<2xf32, #tpu.memory_space<smem>>
    %65 = vector.broadcast %64 : f32 to vector<8x1xf32>
    %66 = arith.mulf %65, %60 : vector<8x1xf32>
    %67 = arith.addf %63, %66 : vector<8x1xf32>
    %c0_13 = arith.constant 0 : index
    %68 = memref.load %arg7[%c0_13] : memref<1xf32, #tpu.memory_space<smem>>
    %69 = vector.broadcast %68 : f32 to vector<8x1xf32>
    %70 = arith.addf %67, %69 : vector<8x1xf32>
    %71 = arith.negf %70 : vector<8x1xf32>
    %72 = math.exp %71 : vector<8x1xf32>
    %cst_14 = arith.constant 1.000000e+00 : f32
    %73 = vector.broadcast %cst_14 : f32 to vector<8x1xf32>
    %74 = arith.addf %73, %72 : vector<8x1xf32>
    %75 = arith.divf %73, %74 : vector<8x1xf32>
    %c0_15 = arith.constant 0 : index
    %c0_16 = arith.constant 0 : index
    %76 = vector.load %arg8[%c0_15, %c0_16] : memref<8x1xf32, #tpu.memory_space<vmem>>, vector<8x1xf32>
    tpu.vector_store %arg8[%c0_15, %c0_16], %75 {strides = array<i32>} : memref<8x1xf32, #tpu.memory_space<vmem>>, vector<8x1xf32>,
    return
  }
  func.func @transform_0(%arg0: i32) -> (i32, i32) {
    %c0_i32 = arith.constant 0 : i32
    %c0_i32_0 = arith.constant 0 : i32
    return %arg0, %c0_i32 : i32, i32
  }
  func.func @transform_1(%arg0: i32) -> (i32, i32) {
    %c0_i32 = arith.constant 0 : i32
    %c0_i32_0 = arith.constant 0 : i32
    %c0_i32_1 = arith.constant 0 : i32
    return %c0_i32, %c0_i32_0 : i32, i32
  }
  func.func @transform_2(%arg0: i32) -> i32 {
    %c0_i32 = arith.constant 0 : i32
    %c0_i32_0 = arith.constant 0 : i32
    return %c0_i32 : i32
  }
  func.func @transform_3(%arg0: i32) -> i32 {
    %c0_i32 = arith.constant 0 : i32
    %c0_i32_0 = arith.constant 0 : i32
    return %c0_i32 : i32
  }
  func.func @transform_4(%arg0: i32) -> i32 {
    %c0_i32 = arith.constant 0 : i32
    %c0_i32_0 = arith.constant 0 : i32
    return %c0_i32 : i32
  }
  func.func @transform_5(%arg0: i32) -> i32 {
    %c0_i32 = arith.constant 0 : i32
    %c0_i32_0 = arith.constant 0 : i32
    return %c0_i32 : i32
  }
  func.func @transform_6(%arg0: i32) -> i32 {
    %c0_i32 = arith.constant 0 : i32
    %c0_i32_0 = arith.constant 0 : i32
    return %c0_i32 : i32
  }
  func.func @transform_7(%arg0: i32) -> (i32, i32) {
    %c0_i32 = arith.constant 0 : i32
    %c0_i32_0 = arith.constant 0 : i32
    return %arg0, %c0_i32 : i32, i32
  }
}

</mosaic_0001>

<bundles_post_ra>
// kernel: tpu_custom_call.1
= control target key start
LH: loop header
LB: loop body
LE: loop exit
PB: predicated region body
PF: predicated region fallthrough
CT: control target
= control target key end

     0   :  { %14 = vsyncpa [#allocation5], 0  ;;  %s353_s0 = inlined_call_operand.hbm [shape: f32[8,16], index: 0, kind: input, shape index: {}]   ;;  %s354_s1 = inlined_call_operand.vmem [shape: f32[2,10], index: 1, kind: input, shape index: {}]   ;;  %s355_s2 = inlined_call_operand.vmem [shape: f32[7], index: 2, kind: input, shape index: {}]   ;;  %s356_s3 = inlined_call_operand.<no memory space> [shape: f32[1], index: 3, kind: input, shape index: {}]   ;;  %s357_s4 = inlined_call_operand.vmem [shape: f32[2], index: 4, kind: input, shape index: {}]   ;;  %s358_s5 = inlined_call_operand.vmem [shape: f32[2], index: 5, kind: input, shape index: {}]   ;;  %s359_s6 = inlined_call_operand.<no memory space> [shape: f32[1], index: 6, kind: input, shape index: {}]   ;;  %s360_s7 = inlined_call_operand.vmem [shape: f32[8,1], index: 7, kind: output, shape index: {}]  }
   0x1   :  { %15 = vsyncpa [#allocation6], 0 }
   0x2   :  { %16 = vsyncpa [#allocation9], 0  ;;  %s47_s26 = sshll.u32 %s357_s4, 4  ;;  %s48_s26 = int_to_ptr.vmem [resolvable:$true] %s47_s26 }
   0x3   :  { %s206_s27 = scalar_lea.vmem %s48_s26, 16  ;;  %p211_p1 = scmp.lt.s32.totalorder %s48_s26, %s48_s26 }
   0x4   :  { %p207_p0 = scmp.ne.s32.totalorder %s48_s26, %s206_s27  ;;  %p212_p2 = scmp.lt.s32.totalorder %s206_s27, %s206_s27 }
   0x6   :  { %p213_p3 = por %p212_p2, %p211_p1 }
   0x8   :  { %p214_p4 = pnand %p213_p3, %p207_p0 }
   0xa   :  { %217 = shalt.err (!%p214_p4)
}
   0xb   :  { %s270_s28 = smov [#allocation8]   ;;  %s271_s29 = smov [#allocation4]  }
   0xc   :  { %50 = dma.vmem_to_smem %s48_s26, 16, %s270_s28, [#allocation9]  }
   0xd   :  { %s23_s30 = sshll.u32 %s271_s29, 4  ;;  %s35_s10 = sshll.u32 %s355_s2, 4  ;;  %s24_s30 = int_to_ptr.vmem [resolvable:$true] %s23_s30  ;;  %s36_s10 = int_to_ptr.vmem [resolvable:$true] %s35_s10 }
   0xe   :  { %s218_s12 = scalar_lea.hbm %s353_s0, 128 }
   0xf   :  { %p219_p5 = scmp.ne.s32.totalorder %s353_s0, %s218_s12  ;;  %p222_p6 = scmp.lt.u32.totalorder %s218_s12, %s353_s0 }
  0x11   :  { %p224_p7 = pnand %p222_p6, %p219_p5 }
  0x13   :  { %227 = shalt.err (!%p224_p7)
}
  0x14   :  { %s228_s17 = scalar_lea.vmem %s24_s30, 128  ;;  %p233_p9 = scmp.lt.s32.totalorder %s24_s30, %s24_s30 }
  0x15   :  { %p229_p8 = scmp.ne.s32.totalorder %s24_s30, %s228_s17  ;;  %p234_p10 = scmp.lt.s32.totalorder %s228_s17, %s228_s17 }
  0x17   :  { %p235_p11 = por %p234_p10, %p233_p9 }
  0x19   :  { %p236_p12 = pnand %p235_p11, %p229_p8 }
  0x1b   :  { %239 = shalt.err (!%p236_p12)
}
  0x1c   :  { %26 = dma.hbm_to_vmem [thread:$0]  %s353_s0, 128, %s24_s30, [#allocation5]  }
  0x1d   :  { %s57_s21 = sshll.u32 %s358_s5, 4  ;;  %s240_s22 = scalar_lea.vmem %s36_s10, 16  ;;  %s58_s21 = int_to_ptr.vmem [resolvable:$true] %s57_s21 }
  0x1e   :  { %p241_p13 = scmp.ne.s32.totalorder %s36_s10, %s240_s22  ;;  %p245_p0 = scmp.lt.s32.totalorder %s36_s10, %s36_s10 }
  0x1f   :  { %p246_p1 = scmp.lt.s32.totalorder %s240_s22, %s240_s22 }
  0x21   :  { %p247_p2 = por %p246_p1, %p245_p0 }
  0x23   :  { %p248_p3 = pnand %p247_p2, %p241_p13 }
  0x25   :  { %251 = shalt.err (!%p248_p3)
}
  0x26   :  { %s272_s23 = smov [#allocation7]   ;;  %s252_s24 = scalar_lea.vmem %s58_s21, 16 }
  0x27   :  { %38 = dma.vmem_to_smem %s36_s10, 16, %s272_s23, [#allocation6]  }
  0x28   :  { %p253_p4 = scmp.ne.s32.totalorder %s58_s21, %s252_s24  ;;  %p257_p5 = scmp.lt.s32.totalorder %s58_s21, %s58_s21 }
  0x29   :  { %p258_p6 = scmp.lt.s32.totalorder %s252_s24, %s252_s24 }
  0x2b   :  { %p259_p7 = por %p258_p6, %p257_p5 }
  0x2d   :  { %p260_p8 = pnand %p259_p7, %p253_p4 }
  0x2f   :  { %263 = shalt.err (!%p260_p8)
}
  0x30   :  { %s273_s0 = smov [#allocation10]  }
  0x31   :  { %60 = dma.vmem_to_smem %s58_s21, 16, %s273_s0, [#allocation9]  }
  0x32   :  { %264 = dma.done.wait [#allocation5], 128  }
  0x33   :  { %265 = vsyncadd [#allocation5], 4294967168 }
  0x34   :  { %266 = dma.done.wait [#allocation6], 16  }
  0x35   :  { %267 = vsyncadd [#allocation6], 4294967280 }
  0x36   :  { %268 = dma.done.wait [#allocation9], 32  }
  0x37   :  { %269 = vsyncadd [#allocation9], 4294967264 }
  0x38   :  { %75 = sfence }
  0x39   :  { %s183_s5 = sld [smem:[#allocation7 + $0x1]]  ;;  %s185_s25 = sld [smem:[#allocation7 + $0x3]]  ;;  %v76_v0 = vld [vmem:[#allocation4] sm:$0xff]  ;;  %v133_v18 = vlaneseq  ;;  %v129_v30 = vstv %s356_s3  ;;  %vm138_vm0 = vcmask 80896   ;;  %v166_v53 = vstv %s359_s6 }
  0x3a   :  { %s184_s26 = sld [smem:[#allocation7 + $0x2]]  ;;  %s186_s27 = sld [smem:[#allocation7 + $0x4]]  ;;  %v132_v31 = vld [vmem:[%s354_s1] sm:$0x3]  ;;  %vm174_vm1 = vcmask 7168  }
  0x3b   :  { %s187_s28 = sld [smem:[#allocation7 + $0x5]]  ;;  %s188_s29 = sld [smem:[#allocation7 + $0x6]]  ;;  %v134_v23 = vshrl.u32 %v133_v18, 7 }
  0x3c   :  { %s274_s30 = smov 127   ;;  %s275_s8 = smov 125  }
  0x3d   :  { %s276_s9 = smov 126   ;;  %s277_s10 = smov 124   ;;  %v147_v28 = vsub.s32 1, %v134_v23  ;;  %v135_v29 = vsub.s32 0, %v134_v23 }
  0x3e   :  { %s278_s11 = smov 123   ;;  %s279_s4 = smov 122  }
  0x3f   :  { %v81_v1 = vstv %s183_s5  ;;  %v97_v3 = vstv %s185_s25  ;;  %s77_s12 = sld [smem:[#allocation7]]  ;;  %v148_v34 = vrot.slane %v132_v31, %v147_v28  ;;  %v136_v35 = vrot.slane %v132_v31, %v135_v29  ;;  %s189_s17 = sld [smem:[#allocation8 + $0x1]] }
  0x40   :  { %v82_v2 = vmul.f32 %v81_v1, %v76_v0  ;;  %v98_v4 = vmul.f32 %v97_v3, %v76_v0  ;;  %v89_v5 = vstv %s184_s26  ;;  %v105_v7 = vstv %s186_s27  ;;  %s142_s2 = sld [smem:[#allocation8]]  ;;  %s190_s18 = sld [smem:[#allocation10 + $0x1]] }
  0x41   :  { %v90_v6 = vmul.f32 %v89_v5, %v76_v0  ;;  %v106_v8 = vmul.f32 %v105_v7, %v76_v0  ;;  %v113_v9 = vstv %s187_s28  ;;  %v121_v10 = vstv %s188_s29  ;;  %s158_s3 = sld [smem:[#allocation10]] }
  0x42   :  { %84 = vrot.lane.b32.xlu0 %v82_v2, %s274_s30  ;;  %100 = vrot.lane.b32.xlu1 %v98_v4, %s275_s8  ;;  %v114_v11 = vmul.f32 %v113_v9, %v76_v0  ;;  %v122_v12 = vmul.f32 %v121_v10, %v76_v0 }
  0x45   :  { %v78_v13 = vstv %s77_s12  ;;  %v154_v41 = vstv %s189_s17 }
  0x46   :  { %92 = vrot.lane.b32.xlu0 %v90_v6, %s276_s9  ;;  %108 = vrot.lane.b32.xlu1 %v106_v8, %s277_s10  ;;  %v79_v14 = vmul.f32 %v78_v13, %v76_v0  ;;  %v143_v42 = vstv %s142_s2  ;;  %v162_v47 = vstv %s190_s18 }
  0x47   :  { %v159_v48 = vstv %s158_s3 }
  0x4a   :  { %116 = vrot.lane.b32.xlu0 %v114_v11, %s278_s11  ;;  %124 = vrot.lane.b32.xlu1 %v122_v12, %s279_s4 }
  0xb4   :  { %v85_v15 = vpop.permute.xlu0 %84  ;;  %v101_v16 = vpop.permute.xlu1 %100 }
  0xb5   :  { %v87_v17 = vadd.f32 %v85_v15, %v79_v14 }
  0xb8   :  { %v93_v19 = vpop.permute.xlu0 %92  ;;  %v109_v21 = vpop.permute.xlu1 %108 }
  0xb9   :  { %v95_v20 = vadd.f32 %v93_v19, %v87_v17 }
  0xbb   :  { %v103_v22 = vadd.f32 %v101_v16, %v95_v20 }
  0xbc   :  { %v117_v24 = vpop.permute.xlu0 %116  ;;  %v125_v26 = vpop.permute.xlu1 %124 }
  0xbd   :  { %v111_v25 = vadd.f32 %v109_v21, %v103_v22 }
  0xbf   :  { %v119_v27 = vadd.f32 %v117_v24, %v111_v25 }
  0xc1   :  { %v127_v32 = vadd.f32 %v125_v26, %v119_v27 }
  0xc3   :  { %v130_v33 = vadd.f32 %v129_v30, %v127_v32 }
  0xc5   :  { %v131_v36 = vmax.f32 %v130_v33, 0.0 }
  0xc7   :  { %v149_v37 = vmul.f32 %v148_v34, %v131_v36  ;;  %v137_v38 = vmul.f32 %v136_v35, %v131_v36 }
  0xc9   :  { %v150_v39 = vsel %vm138_vm0, %v149_v37, 0.0  ;;  %v139_v40 = vsel %vm138_vm0, %v137_v38, 0.0 }
  0xca   :  { %151 = vadd.xlane.f32.xlu1 %v150_v39  ;;  %140 = vadd.xlane.f32.xlu0 %v139_v40 }
 0x157   :  { %v152_v43 = vpop.xlane.xlu1 %151  ;;  %v141_v44 = vpop.xlane.xlu0 %140 }
 0x158   :  { %v155_v45 = vadd.f32 %v154_v41, %v152_v43  ;;  %v144_v46 = vadd.f32 %v143_v42, %v141_v44 }
 0x15a   :  { %v157_v49 = vmax.f32 %v155_v45, 0.0  ;;  %v156_v50 = vmax.f32 %v144_v46, 0.0 }
 0x15c   :  { %v163_v51 = vmul.f32 %v162_v47, %v157_v49  ;;  %v160_v52 = vmul.f32 %v159_v48, %v156_v50 }
 0x15e   :  { %v164_v54 = vadd.f32 %v163_v51, %v160_v52 }
 0x160   :  { %v167_v55 = vadd.f32 %v166_v53, %v164_v54 }
 0x162   :  { %v191_v56 = vmul.f32 -1.442695, %v167_v55 }
 0x164   :  { %202 = vpow2.f32 %v191_v56 }
 0x16e   :  { %v203_v57 = vpop.eup %202 }
 0x16f   :  { %v171_v58 = vadd.f32 1.0, %v203_v57 }
 0x171   :  { %204 = vrcp.f32 %v171_v58 }
 0x17b   :  { %v205_v59 = vpop.eup %204 }
 0x17c   :  { %175 = vst.msk [vmem:[%s360_s7] sm:$0xff] %vm174_vm1, %v205_v59 }
 0x17d   :  { %180 = vsyncpa [#allocation5], 1 }
 0x17e   :  { %181 = vsyncpa [#allocation6], 1 }
 0x17f   :  { %182 = vsyncpa [#allocation9], 1 }

</bundles_post_ra>
